<compile_context>
chip_gen: v6e
topology: v6e:2x2x1
jax: 0.10.0
libtpu: 0.0.40
codegen_flags: <defaults>
</compile_context>

<pallas_src>
import jax
import jax.numpy as jnp
from jax.experimental import pallas as pl
from jax.experimental.pallas import tpu as pltpu


def linear_kernel(x_ref, w_ref, b_ref, o_ref):
    # x_ref: (TB, IN) VMEM activation tile.
    # w_ref: (TB, IN) VMEM weight tile (row pre-broadcast in the wrapper,
    #        resident across all grid steps via index_map -> (0, 0)).
    # b_ref: (1,)     SMEM f32 bias scalar.
    # o_ref: (TB, 1)  VMEM output tile.
    x = x_ref[...].astype(jnp.float32)   # no-op for f32; f32 accumulate for bf16 in
    w = w_ref[...].astype(jnp.float32)
    b = b_ref[0]                         # scalar bias from SMEM (sld)
    # VPU elementwise multiply + XLU lane reduce; bias add folded into VPU add.
    y = jnp.sum(x * w, axis=-1, keepdims=True) + b
    o_ref[...] = y.astype(o_ref.dtype)


def linear_pallas(x, weight, bias, *, tile_batch=512):
    batch, in_f = x.shape
    out_f, w_in = weight.shape
    assert w_in == in_f
    # This formulation (weight-row broadcast + lane reduce) assumes the single
    # output feature of nn.Linear(10, 1). out_features > 1 would need an
    # MXU / lane-dense formulation instead.
    assert out_f == 1

    # Tile the batch: whole batch in one tile when small, else 512-row tiles
    # (multiple of 8) so the per-step overhead amortizes and DMA stays dense.
    if batch <= tile_batch:
        tb = batch
    else:
        tb = (tile_batch // 8) * 8
    grid = (pl.cdiv(batch, tb),)

    # Broadcast the weight row once, outside the kernel / grid loop.
    w_rows = jnp.broadcast_to(weight.astype(x.dtype), (tb, in_f))
    b_smem = bias.astype(jnp.float32)

    return pl.pallas_call(
        linear_kernel,
        out_shape=jax.ShapeDtypeStruct((batch, out_f), x.dtype),
        grid=grid,
        in_specs=[
            pl.BlockSpec((tb, in_f), lambda i: (i, 0)),          # x tile
            pl.BlockSpec((tb, in_f), lambda i: (0, 0)),          # weight (resident)
            pl.BlockSpec(memory_space=pltpu.MemorySpace.SMEM),   # bias scalar
        ],
        out_specs=pl.BlockSpec((tb, out_f), lambda i: (i, 0)),
        compiler_params=pltpu.CompilerParams(
            dimension_semantics=("parallel",),                   # 2 TCs on v7x
        ),
    )(x, w_rows, b_smem)


if __name__ == "__main__":
    key = jax.random.PRNGKey(0)
    k_x, k_w, k_b = jax.random.split(key, 3)

    batch, in_features, out_features = 8, 10, 1

    # Deterministic parameter init (same shapes as torch.nn.Linear(10, 1)).
    weight = jax.random.uniform(
        k_w, (out_features, in_features), dtype=jnp.float32, minval=-0.3, maxval=0.3
    )
    bias = jax.random.uniform(
        k_b, (out_features,), dtype=jnp.float32, minval=-0.3, maxval=0.3
    )
    x = jax.random.normal(k_x, (batch, in_features), dtype=jnp.float32)

    out = linear_pallas(x, weight, bias)
    out = jax.block_until_ready(out)

    # Reference check against plain JAX.
    ref = x @ weight.T + bias
    assert out.shape == (batch, out_features)
    assert jnp.allclose(out, ref, atol=1e-5), "mismatch vs reference"

    print("KERNEL_OK")
</pallas_src>

<mosaic_0001>
module attributes {stable_mosaic.version = 11 : i64} {
  func.func @linear_kernel(%arg0: i32, %arg1: memref<8x10xf32, #tpu.memory_space<vmem>>, %arg2: memref<8x10xf32, #tpu.memory_space<vmem>>, %arg3: memref<1xf32, #tpu.memory_space<smem>>, %arg4: memref<8x1xf32, #tpu.memory_space<vmem>>) attributes {dimension_semantics = [#tpu.dimension_semantics<parallel>], iteration_bounds = array<i64: 1>, scalar_prefetch = 0 : i64, scratch_operands = 0 : i64, tpu.core_type = #tpu.core_type<tc>, window_params = [{transform_indices = @transform_0, window_bounds = array<i64: 8, 10>}, {pipeline_mode = #tpu.pipeline_mode<synchronous>, transform_indices = @transform_1, window_bounds = array<i64: 8, 10>}, {transform_indices = @transform_2, window_bounds = array<i64: 1>}, {transform_indices = @transform_3, window_bounds = array<i64: 8, 1>}]} {
    %c0 = arith.constant 0 : index
    %c0_0 = arith.constant 0 : index
    %0 = vector.load %arg1[%c0, %c0_0] : memref<8x10xf32, #tpu.memory_space<vmem>>, vector<8x10xf32>
    %c0_1 = arith.constant 0 : index
    %c0_2 = arith.constant 0 : index
    %1 = vector.load %arg2[%c0_1, %c0_2] : memref<8x10xf32, #tpu.memory_space<vmem>>, vector<8x10xf32>
    %c0_3 = arith.constant 0 : index
    %2 = memref.load %arg3[%c0_3] : memref<1xf32, #tpu.memory_space<smem>>
    %3 = arith.mulf %0, %1 : vector<8x10xf32>
    %cst = arith.constant dense<0.000000e+00> : vector<8xf32>
    %4 = vector.multi_reduction <add>, %3, %cst [1] : vector<8x10xf32> to vector<8xf32>
    %5 = vector.shape_cast %4 : vector<8xf32> to vector<8x1xf32>
    %6 = vector.broadcast %2 : f32 to vector<8x1xf32>
    %7 = arith.addf %5, %6 : vector<8x1xf32>
    %c0_4 = arith.constant 0 : index
    %c0_5 = arith.constant 0 : index
    %8 = vector.load %arg4[%c0_4, %c0_5] : memref<8x1xf32, #tpu.memory_space<vmem>>, vector<8x1xf32>
    tpu.vector_store %arg4[%c0_4, %c0_5], %7 {strides = array<i32>} : memref<8x1xf32, #tpu.memory_space<vmem>>, vector<8x1xf32>,
    return
  }
  func.func @transform_0(%arg0: i32) -> (i32, i32) {
    %c0_i32 = arith.constant 0 : i32
    %c0_i32_0 = arith.constant 0 : i32
    return %arg0, %c0_i32 : i32, i32
  }
  func.func @transform_1(%arg0: i32) -> (i32, i32) {
    %c0_i32 = arith.constant 0 : i32
    %c0_i32_0 = arith.constant 0 : i32
    %c0_i32_1 = arith.constant 0 : i32
    return %c0_i32, %c0_i32_0 : i32, i32
  }
  func.func @transform_2(%arg0: i32) -> i32 {
    %c0_i32 = arith.constant 0 : i32
    %c0_i32_0 = arith.constant 0 : i32
    return %c0_i32 : i32
  }
  func.func @transform_3(%arg0: i32) -> (i32, i32) {
    %c0_i32 = arith.constant 0 : i32
    %c0_i32_0 = arith.constant 0 : i32
    return %arg0, %c0_i32 : i32, i32
  }
}

</mosaic_0001>

<bundles_post_ra>
// kernel: tpu_custom_call.1
= control target key start
LH: loop header
LB: loop body
LE: loop exit
PB: predicated region body
PF: predicated region fallthrough
CT: control target
= control target key end

     0   :  { %9 = vsyncpa [#allocation4], 0  ;;  %s137_s0 = inlined_call_operand.hbm [shape: f32[8,10], index: 0, kind: input, shape index: {}]   ;;  %s138_s1 = inlined_call_operand.hbm [shape: f32[8,10], index: 1, kind: input, shape index: {}]   ;;  %s139_s2 = inlined_call_operand.<no memory space> [shape: f32[1], index: 2, kind: input, shape index: {}]   ;;  %s140_s3 = inlined_call_operand.vmem [shape: f32[8,1], index: 3, kind: output, shape index: {}]  }
   0x1   :  { %10 = vsyncpa [#allocation6], 0  ;;  %s103_s12 = smov [#allocation3]   ;;  %s104_s14 = smov [#allocation5]  }
   0x2   :  { %s17_s13 = sshll.u32 %s103_s12, 4  ;;  %s27_s15 = sshll.u32 %s104_s14, 4  ;;  %s18_s13 = int_to_ptr.vmem [resolvable:$true] %s17_s13  ;;  %s28_s15 = int_to_ptr.vmem [resolvable:$true] %s27_s15 }
   0x3   :  { %s67_s16 = scalar_lea.vmem %s18_s13, 128  ;;  %p72_p1 = scmp.lt.s32.totalorder %s18_s13, %s18_s13 }
   0x4   :  { %p68_p0 = scmp.ne.s32.totalorder %s18_s13, %s67_s16  ;;  %p73_p2 = scmp.lt.s32.totalorder %s67_s16, %s67_s16 }
   0x6   :  { %p74_p3 = por %p73_p2, %p72_p1 }
   0x8   :  { %p75_p4 = pnand %p74_p3, %p68_p0 }
   0xa   :  { %78 = shalt.err (!%p75_p4)
}
   0xb   :  { %20 = dma.hbm_to_vmem [thread:$0]  %s137_s0, 128, %s18_s13, [#allocation4]  }
   0xc   :  { %s87_s19 = scalar_lea.vmem %s28_s15, 128  ;;  %p92_p6 = scmp.lt.s32.totalorder %s28_s15, %s28_s15 }
   0xd   :  { %p88_p5 = scmp.ne.s32.totalorder %s28_s15, %s87_s19  ;;  %p93_p7 = scmp.lt.s32.totalorder %s87_s19, %s87_s19 }
   0xf   :  { %p94_p8 = por %p93_p7, %p92_p6 }
  0x11   :  { %p95_p9 = pnand %p94_p8, %p88_p5 }
  0x13   :  { %98 = shalt.err (!%p95_p9)
}
  0x14   :  { %30 = dma.hbm_to_vmem [thread:$0]  %s138_s1, 128, %s28_s15, [#allocation6]  }
  0x15   :  { %99 = dma.done.wait [#allocation4], 128  }
  0x16   :  { %100 = vsyncadd [#allocation4], 4294967168 }
  0x17   :  { %101 = dma.done.wait [#allocation6], 128  }
  0x18   :  { %102 = vsyncadd [#allocation6], 4294967168  ;;  %v39_v0 = vld [vmem:[#allocation3] sm:$0xff]  ;;  %v40_v1 = vld [vmem:[#allocation5] sm:$0xff]  ;;  %vm43_vm0 = vcmask 80896   ;;  %v47_v4 = vstv %s139_s2  ;;  %vm49_vm1 = vcmask 7168  }
  0x19   :  { %v42_v2 = vmul.f32 %v40_v1, %v39_v0 }
  0x1b   :  { %v44_v3 = vsel %vm43_vm0, %v42_v2, 0.0 }
  0x1c   :  { %45 = vadd.xlane.f32.xlu0 %v44_v3 }
  0xa5   :  { %v46_v5 = vpop.xlane.xlu0 %45 }
  0xa6   :  { %v48_v6 = vadd.f32 %v47_v4, %v46_v5 }
  0xa8   :  { %50 = vst.msk [vmem:[%s140_s3] sm:$0xff] %vm49_vm1, %v48_v6 }
  0xa9   :  { %55 = vsyncpa [#allocation4], 1 }
  0xaa   :  { %56 = vsyncpa [#allocation6], 1 }

</bundles_post_ra>
